<compile_context>
chip_gen: v7x
topology: tpu7x:2x2x1
jax: 0.10.0
libtpu: 0.0.40
codegen_flags: <defaults>
</compile_context>

<pallas_src>
import functools

import jax
import jax.numpy as jnp
from jax import lax
from jax.experimental import pallas as pl
from jax.experimental.pallas import tpu as pltpu


# ----------------------------------------------------------------------------
# Fused flash-attention kernel body.
# Grid: (batch b, q-tile i, head h, kv-tile j).
# ----------------------------------------------------------------------------
def _attention_flash_kernel(x_ref, ctx_ref, wq_ref, wk_ref, wv_ref, wout_ref,
                            bout_ref, *rest, scale, has_mask):
    if has_mask:
        mask_ref, o_ref, q_scr, m_scr, l_scr, acc_scr, y_scr = rest
    else:
        o_ref, q_scr, m_scr, l_scr, acc_scr, y_scr = rest

    h = pl.program_id(2)
    j = pl.program_id(3)
    n_heads = pl.num_programs(2)
    n_kv = pl.num_programs(3)
    f32 = jnp.float32

    # --- per-(b, i, h) init: project q once, reset online-softmax state -----
    @pl.when(j == 0)
    def _init_head():
        q = jnp.dot(x_ref[...], wq_ref[...], preferred_element_type=f32) * scale
        q_scr[...] = q.astype(q_scr.dtype)          # keep MXU-native dtype
        m_scr[...] = jnp.full(m_scr.shape, -jnp.inf, f32)
        l_scr[...] = jnp.zeros(l_scr.shape, f32)
        acc_scr[...] = jnp.zeros(acc_scr.shape, f32)

    # --- per-(b, i) init: reset the output-projection accumulator -----------
    @pl.when(jnp.logical_and(h == 0, j == 0))
    def _init_out():
        y_scr[...] = jnp.zeros(y_scr.shape, f32)

    # --- kv projection for this context tile / head (native dtype MXU) ------
    ctx = ctx_ref[...]
    k = jnp.dot(ctx, wk_ref[...], preferred_element_type=f32).astype(ctx.dtype)
    v = jnp.dot(ctx, wv_ref[...], preferred_element_type=f32).astype(ctx.dtype)

    # sim = q @ k^T without materializing a transpose (contract minor dims)
    sim = lax.dot_general(q_scr[...], k, (((1,), (1,)), ((), ())),
                          preferred_element_type=f32)          # (nt, kt) f32

    if has_mask:
        valid = mask_ref[...] != 0.0                           # (1, kt)
        sim = jnp.where(valid, sim, -jnp.finfo(f32).max)

    # --- online softmax update (f32 element-wise math) ----------------------
    m_prev = m_scr[...]
    m_new = jnp.maximum(m_prev, jnp.max(sim, axis=-1, keepdims=True))
    alpha = jnp.exp(m_prev - m_new)
    p = jnp.exp(sim - m_new)
    l_scr[...] = alpha * l_scr[...] + jnp.sum(p, axis=-1, keepdims=True)
    acc_scr[...] = alpha * acc_scr[...] + jnp.dot(
        p.astype(v.dtype), v, preferred_element_type=f32)
    m_scr[...] = m_new

    # --- per-head finalize: normalize and fold this head into y -------------
    @pl.when(j == n_kv - 1)
    def _fold_head():
        inv_l = pl.reciprocal(l_scr[...], approx=False)        # exact
        out_h = (acc_scr[...] * inv_l).astype(x_ref.dtype)
        y_scr[...] = y_scr[...] + jnp.dot(out_h, wout_ref[...],
                                          preferred_element_type=f32)

    # --- final store (bias added once) --------------------------------------
    @pl.when(jnp.logical_and(h == n_heads - 1, j == n_kv - 1))
    def _store():
        o_ref[...] = (y_scr[...] + bout_ref[...].astype(f32)).astype(o_ref.dtype)


def _pick_tile(total, target):
    """Largest simple tile: `target` if it divides `total`, else whole axis."""
    if total <= target or total % target != 0:
        return total
    return target


# ----------------------------------------------------------------------------
# Wrapper: one fused pallas_call for the whole Attention.forward
# ----------------------------------------------------------------------------
def attention_forward(x, params, heads, dim_head, context=None, mask=None,
                      q_tile=128, kv_tile=512):
    """x: (B, N, query_dim); context: (B, M, context_dim) or None;
    mask: optional boolean (B, M) — True = attend, False = masked out."""
    B, N, Dq = x.shape
    ctx = x if context is None else context
    M, Dc = ctx.shape[1], ctx.shape[2]
    inner = heads * dim_head
    scale = dim_head ** (-0.5)
    has_mask = mask is not None

    nt = _pick_tile(N, q_tile)
    kt = _pick_tile(M, kv_tile)

    # Host-side (free) per-head weight layout — removes all in-kernel lane
    # slicing / concat of dim_head-wide chunks.  Matches the PyTorch chunk/
    # rearrange head split exactly.
    wq3 = params["w_q"].reshape(Dq, heads, dim_head).transpose(1, 0, 2)      # (h, Dq, d)
    wkv = params["w_kv"]
    wk3 = wkv[:, :inner].reshape(Dc, heads, dim_head).transpose(1, 0, 2)     # (h, Dc, d)
    wv3 = wkv[:, inner:].reshape(Dc, heads, dim_head).transpose(1, 0, 2)     # (h, Dc, d)
    wout3 = params["w_out"].reshape(heads, dim_head, Dq)                     # (h, d, Dq)
    bout = params["b_out"].reshape(1, Dq)

    kernel = functools.partial(_attention_flash_kernel, scale=scale,
                               has_mask=has_mask)

    in_specs = [
        pl.BlockSpec((None, nt, Dq), lambda b, i, h, j: (b, i, 0)),          # x
        pl.BlockSpec((None, kt, Dc), lambda b, i, h, j: (b, j, 0)),          # context
        pl.BlockSpec((None, Dq, dim_head), lambda b, i, h, j: (h, 0, 0)),    # Wq[h]
        pl.BlockSpec((None, Dc, dim_head), lambda b, i, h, j: (h, 0, 0)),    # Wk[h]
        pl.BlockSpec((None, Dc, dim_head), lambda b, i, h, j: (h, 0, 0)),    # Wv[h]
        pl.BlockSpec((None, dim_head, Dq), lambda b, i, h, j: (h, 0, 0)),    # Wout[h]
        pl.BlockSpec((1, Dq), lambda b, i, h, j: (0, 0)),                    # b_out
    ]
    args = [x, ctx, wq3, wk3, wv3, wout3, bout]
    if has_mask:
        in_specs.append(pl.BlockSpec((None, 1, kt), lambda b, i, h, j: (b, 0, j)))
        args.append(mask.astype(jnp.float32).reshape(B, 1, M))

    scratch_shapes = [
        pltpu.VMEM((nt, dim_head), x.dtype),     # q (scaled), per head
        pltpu.VMEM((nt, 1), jnp.float32),        # running max m
        pltpu.VMEM((nt, 1), jnp.float32),        # running denom l
        pltpu.VMEM((nt, dim_head), jnp.float32),  # running numerator acc
        pltpu.VMEM((nt, Dq), jnp.float32),       # output-projection accumulator
    ]

    itemsize = x.dtype.itemsize
    flops = 2 * B * (N * Dq * inner            # q projection
                     + 2 * M * Dc * inner      # kv projection
                     + 2 * heads * N * M * dim_head  # sim + p @ v
                     + N * inner * Dq)         # out projection
    transcendentals = B * heads * N * M
    bytes_accessed = int(
        B * N * Dq * itemsize * 2              # x in, out
        + B * M * Dc * ctx.dtype.itemsize
        + (Dq * inner + 2 * Dc * inner + inner * Dq + Dq) * 4
        + (B * M * 4 if has_mask else 0))

    return pl.pallas_call(
        kernel,
        out_shape=jax.ShapeDtypeStruct((B, N, Dq), x.dtype),
        grid=(B, N // nt, heads, M // kt),
        in_specs=in_specs,
        out_specs=pl.BlockSpec((None, nt, Dq), lambda b, i, h, j: (b, i, 0)),
        scratch_shapes=scratch_shapes,
        compiler_params=pltpu.CompilerParams(
            dimension_semantics=("parallel", "parallel", "arbitrary", "arbitrary")),
        cost_estimate=pl.CostEstimate(flops=int(flops),
                                      transcendentals=int(transcendentals),
                                      bytes_accessed=bytes_accessed),
    )(*args)


# ----------------------------------------------------------------------------
# Pure-JAX reference (mirrors the PyTorch module, eval mode)
# ----------------------------------------------------------------------------
def attention_reference(x, params, heads, dim_head, context=None, mask=None):
    ctx = x if context is None else context
    inner = heads * dim_head
    scale = dim_head ** (-0.5)
    B, N, _ = x.shape
    q = x @ params["w_q"]
    kv = ctx @ params["w_kv"]
    k, v = kv[..., :inner], kv[..., inner:]

    def sh(t):
        b, n, _ = t.shape
        return (t.reshape(b, n, heads, dim_head)
                 .transpose(0, 2, 1, 3).reshape(b * heads, n, dim_head))

    qh, kh, vh = map(sh, (q, k, v))
    sim = jnp.einsum("bid,bjd->bij", qh, kh) * scale
    if mask is not None:
        m = jnp.repeat(mask, heads, axis=0)[:, None, :]          # (b*h, 1, M)
        sim = jnp.where(m, sim, -jnp.finfo(sim.dtype).max)
    attn = jax.nn.softmax(sim, axis=-1)
    oh = jnp.einsum("bij,bjd->bid", attn, vh)
    out = (oh.reshape(B, heads, N, dim_head)
             .transpose(0, 2, 1, 3).reshape(B, N, inner))
    return out @ params["w_out"] + params["b_out"]


# ----------------------------------------------------------------------------
if __name__ == "__main__":
    query_dim = 32
    heads = 2
    dim_head = 16
    inner = heads * dim_head

    key = jax.random.PRNGKey(0)
    (kq, kkv, kwo, kbo, kx1, kq2, kkv2, kwo2, kbo2,
     kx2, kc2, km2, kx3, kc3) = jax.random.split(key, 14)

    # shared params (context_dim == query_dim), used for self-attn / decoder
    params = {
        "w_q":   0.05 * jax.random.normal(kq,  (query_dim, inner), jnp.float32),
        "w_kv":  0.05 * jax.random.normal(kkv, (query_dim, 2 * inner), jnp.float32),
        "w_out": 0.05 * jax.random.normal(kwo, (inner, query_dim), jnp.float32),
        "b_out": 0.01 * jax.random.normal(kbo, (query_dim,), jnp.float32),
    }

    # 1) latent self-attention (context=None, mask=None)
    B, N = 2, 8
    x1 = jax.random.normal(kx1, (B, N, query_dim), jnp.float32)
    out1 = jax.block_until_ready(attention_forward(x1, params, heads, dim_head))
    ref1 = attention_reference(x1, params, heads, dim_head)
    assert out1.shape == (B, N, query_dim)
    assert jnp.allclose(out1, ref1, atol=1e-3, rtol=1e-3), "self-attn mismatch"

    # 2) encoder cross-attention with padding mask, context_dim != query_dim,
    #    exercising multi q-tile / multi kv-tile online-softmax path
    ctx_dim = 64
    N2, M2 = 16, 256
    params2 = {
        "w_q":   0.05 * jax.random.normal(kq2,  (query_dim, inner), jnp.float32),
        "w_kv":  0.05 * jax.random.normal(kkv2, (ctx_dim, 2 * inner), jnp.float32),
        "w_out": 0.05 * jax.random.normal(kwo2, (inner, query_dim), jnp.float32),
        "b_out": 0.01 * jax.random.normal(kbo2, (query_dim,), jnp.float32),
    }
    x2 = jax.random.normal(kx2, (B, N2, query_dim), jnp.float32)
    ctx2 = jax.random.normal(kc2, (B, M2, ctx_dim), jnp.float32)
    mask2 = jax.random.bernoulli(km2, 0.7, (B, M2))
    mask2 = mask2.at[:, 0].set(True)   # keep >=1 valid token per row
    out2 = jax.block_until_ready(
        attention_forward(x2, params2, heads, dim_head, context=ctx2,
                          mask=mask2, q_tile=8, kv_tile=128))
    ref2 = attention_reference(x2, params2, heads, dim_head,
                               context=ctx2, mask=mask2)
    assert out2.shape == (B, N2, query_dim)
    assert jnp.allclose(out2, ref2, atol=1e-3, rtol=1e-3), "cross-attn mismatch"

    # 3) decoder cross-attention: single query token over the latent array
    M3 = 32
    x3 = jax.random.normal(kx3, (B, 1, query_dim), jnp.float32)
    ctx3 = jax.random.normal(kc3, (B, M3, query_dim), jnp.float32)
    out3 = jax.block_until_ready(
        attention_forward(x3, params, heads, dim_head, context=ctx3))
    ref3 = attention_reference(x3, params, heads, dim_head, context=ctx3)
    assert out3.shape == (B, 1, query_dim)
    assert jnp.allclose(out3, ref3, atol=1e-3, rtol=1e-3), "decoder-attn mismatch"

    print("KERNEL_OK")
</pallas_src>

<mosaic_0001>
module attributes {stable_mosaic.version = 11 : i64} {
  func.func @_attention_flash_kernel(%arg0: i32, %arg1: i32, %arg2: i32, %arg3: i32, %arg4: memref<1x8x32xf32, #tpu.memory_space<vmem>>, %arg5: memref<1x8x32xf32, #tpu.memory_space<vmem>>, %arg6: memref<1x32x16xf32, #tpu.memory_space<vmem>>, %arg7: memref<1x32x16xf32, #tpu.memory_space<vmem>>, %arg8: memref<1x32x16xf32, #tpu.memory_space<vmem>>, %arg9: memref<1x16x32xf32, #tpu.memory_space<vmem>>, %arg10: memref<1x32xf32, #tpu.memory_space<vmem>>, %arg11: memref<1x8x32xf32, #tpu.memory_space<vmem>>, %arg12: memref<8x16xf32, #tpu.memory_space<vmem>>, %arg13: memref<8x1xf32, #tpu.memory_space<vmem>>, %arg14: memref<8x1xf32, #tpu.memory_space<vmem>>, %arg15: memref<8x16xf32, #tpu.memory_space<vmem>>, %arg16: memref<8x32xf32, #tpu.memory_space<vmem>>) attributes {dimension_semantics = [#tpu.dimension_semantics<parallel>, #tpu.dimension_semantics<parallel>, #tpu.dimension_semantics<arbitrary>, #tpu.dimension_semantics<arbitrary>], iteration_bounds = array<i64: 2, 1, 2, 1>, scalar_prefetch = 0 : i64, scratch_operands = 5 : i64, tpu.core_type = #tpu.core_type<tc>, window_params = [{transform_indices = @transform_0, window_bounds = array<i64: 1, 8, 32>}, {transform_indices = @transform_1, window_bounds = array<i64: 1, 8, 32>}, {transform_indices = @transform_2, window_bounds = array<i64: 1, 32, 16>}, {transform_indices = @transform_3, window_bounds = array<i64: 1, 32, 16>}, {transform_indices = @transform_4, window_bounds = array<i64: 1, 32, 16>}, {transform_indices = @transform_5, window_bounds = array<i64: 1, 16, 32>}, {pipeline_mode = #tpu.pipeline_mode<synchronous>, transform_indices = @transform_6, window_bounds = array<i64: 1, 32>}, {transform_indices = @transform_7, window_bounds = array<i64: 1, 8, 32>}]} {
    %c0_i32 = arith.constant 0 : i32
    %0 = arith.cmpi eq, %arg3, %c0_i32 : i32
    %1 = arith.extui %0 : i1 to i32
    %c0_i32_0 = arith.constant 0 : i32
    %2 = arith.cmpi ne, %1, %c0_i32_0 : i32
    scf.if %2 {
      %c0_35 = arith.constant 0 : index
      %c0_36 = arith.constant 0 : index
      %c0_37 = arith.constant 0 : index
      %48 = vector.load %arg4[%c0_35, %c0_36, %c0_37] : memref<1x8x32xf32, #tpu.memory_space<vmem>>, vector<1x8x32xf32>
      %49 = vector.shape_cast %48 : vector<1x8x32xf32> to vector<8x32xf32>
      %c0_38 = arith.constant 0 : index
      %c0_39 = arith.constant 0 : index
      %c0_40 = arith.constant 0 : index
      %50 = vector.load %arg6[%c0_38, %c0_39, %c0_40] : memref<1x32x16xf32, #tpu.memory_space<vmem>>, vector<1x32x16xf32>
      %51 = vector.shape_cast %50 : vector<1x32x16xf32> to vector<32x16xf32>
      %cst_41 = arith.constant dense<0.000000e+00> : vector<8x16xf32>
      %52 = tpu.matmul %49, %51, %cst_41 {dimension_numbers = #tpu.dot_dimension_numbers<[1], [0], [0], [1], [0, 0, 1, 1], [], []>} : vector<8x32xf32>, vector<32x16xf32>, vector<8x16xf32> -> vector<8x16xf32>
      %cst_42 = arith.constant 2.500000e-01 : f32
      %53 = vector.broadcast %cst_42 : f32 to vector<8x16xf32>
      %54 = arith.mulf %52, %53 : vector<8x16xf32>
      %c0_43 = arith.constant 0 : index
      %c0_44 = arith.constant 0 : index
      %55 = vector.load %arg12[%c0_43, %c0_44] : memref<8x16xf32, #tpu.memory_space<vmem>>, vector<8x16xf32>
      tpu.vector_store %arg12[%c0_43, %c0_44], %54 {strides = array<i32>} : memref<8x16xf32, #tpu.memory_space<vmem>>, vector<8x16xf32>,
      %cst_45 = arith.constant 0xFF800000 : f32
      %56 = vector.broadcast %cst_45 : f32 to vector<8x1xf32>
      %c0_46 = arith.constant 0 : index
      %c0_47 = arith.constant 0 : index
      %57 = vector.load %arg13[%c0_46, %c0_47] : memref<8x1xf32, #tpu.memory_space<vmem>>, vector<8x1xf32>
      tpu.vector_store %arg13[%c0_46, %c0_47], %56 {strides = array<i32>} : memref<8x1xf32, #tpu.memory_space<vmem>>, vector<8x1xf32>,
      %cst_48 = arith.constant 0.000000e+00 : f32
      %58 = vector.broadcast %cst_48 : f32 to vector<8x1xf32>
      %c0_49 = arith.constant 0 : index
      %c0_50 = arith.constant 0 : index
      %59 = vector.load %arg14[%c0_49, %c0_50] : memref<8x1xf32, #tpu.memory_space<vmem>>, vector<8x1xf32>
      tpu.vector_store %arg14[%c0_49, %c0_50], %58 {strides = array<i32>} : memref<8x1xf32, #tpu.memory_space<vmem>>, vector<8x1xf32>,
      %cst_51 = arith.constant 0.000000e+00 : f32
      %60 = vector.broadcast %cst_51 : f32 to vector<8x16xf32>
      %c0_52 = arith.constant 0 : index
      %c0_53 = arith.constant 0 : index
      %61 = vector.load %arg15[%c0_52, %c0_53] : memref<8x16xf32, #tpu.memory_space<vmem>>, vector<8x16xf32>
      tpu.vector_store %arg15[%c0_52, %c0_53], %60 {strides = array<i32>} : memref<8x16xf32, #tpu.memory_space<vmem>>, vector<8x16xf32>,
    } else {
    }
    %c0_i32_1 = arith.constant 0 : i32
    %3 = arith.cmpi eq, %arg2, %c0_i32_1 : i32
    %c0_i32_2 = arith.constant 0 : i32
    %4 = arith.cmpi eq, %arg3, %c0_i32_2 : i32
    %5 = arith.andi %3, %4 : i1
    %6 = arith.extui %5 : i1 to i32
    %c0_i32_3 = arith.constant 0 : i32
    %7 = arith.cmpi ne, %6, %c0_i32_3 : i32
    scf.if %7 {
      %cst_35 = arith.constant 0.000000e+00 : f32
      %48 = vector.broadcast %cst_35 : f32 to vector<8x32xf32>
      %c0_36 = arith.constant 0 : index
      %c0_37 = arith.constant 0 : index
      %49 = vector.load %arg16[%c0_36, %c0_37] : memref<8x32xf32, #tpu.memory_space<vmem>>, vector<8x32xf32>
      tpu.vector_store %arg16[%c0_36, %c0_37], %48 {strides = array<i32>} : memref<8x32xf32, #tpu.memory_space<vmem>>, vector<8x32xf32>,
    } else {
    }
    %c0 = arith.constant 0 : index
    %c0_4 = arith.constant 0 : index
    %c0_5 = arith.constant 0 : index
    %8 = vector.load %arg5[%c0, %c0_4, %c0_5] : memref<1x8x32xf32, #tpu.memory_space<vmem>>, vector<1x8x32xf32>
    %9 = vector.shape_cast %8 : vector<1x8x32xf32> to vector<8x32xf32>
    %c0_6 = arith.constant 0 : index
    %c0_7 = arith.constant 0 : index
    %c0_8 = arith.constant 0 : index
    %10 = vector.load %arg7[%c0_6, %c0_7, %c0_8] : memref<1x32x16xf32, #tpu.memory_space<vmem>>, vector<1x32x16xf32>
    %11 = vector.shape_cast %10 : vector<1x32x16xf32> to vector<32x16xf32>
    %cst = arith.constant dense<0.000000e+00> : vector<8x16xf32>
    %12 = tpu.matmul %9, %11, %cst {dimension_numbers = #tpu.dot_dimension_numbers<[1], [0], [0], [1], [0, 0, 1, 1], [], []>} : vector<8x32xf32>, vector<32x16xf32>, vector<8x16xf32> -> vector<8x16xf32>
    %c0_9 = arith.constant 0 : index
    %c0_10 = arith.constant 0 : index
    %c0_11 = arith.constant 0 : index
    %13 = vector.load %arg8[%c0_9, %c0_10, %c0_11] : memref<1x32x16xf32, #tpu.memory_space<vmem>>, vector<1x32x16xf32>
    %14 = vector.shape_cast %13 : vector<1x32x16xf32> to vector<32x16xf32>
    %cst_12 = arith.constant dense<0.000000e+00> : vector<8x16xf32>
    %15 = tpu.matmul %9, %14, %cst_12 {dimension_numbers = #tpu.dot_dimension_numbers<[1], [0], [0], [1], [0, 0, 1, 1], [], []>} : vector<8x32xf32>, vector<32x16xf32>, vector<8x16xf32> -> vector<8x16xf32>
    %c0_13 = arith.constant 0 : index
    %c0_14 = arith.constant 0 : index
    %16 = vector.load %arg12[%c0_13, %c0_14] : memref<8x16xf32, #tpu.memory_space<vmem>>, vector<8x16xf32>
    %cst_15 = arith.constant dense<0.000000e+00> : vector<8x8xf32>
    %17 = tpu.matmul %16, %12, %cst_15 {dimension_numbers = #tpu.dot_dimension_numbers<[1], [1], [0], [0], [0, 0, 1, 0], [], []>} : vector<8x16xf32>, vector<8x16xf32>, vector<8x8xf32> -> vector<8x8xf32>
    %c0_16 = arith.constant 0 : index
    %c0_17 = arith.constant 0 : index
    %18 = vector.load %arg13[%c0_16, %c0_17] : memref<8x1xf32, #tpu.memory_space<vmem>>, vector<8x1xf32>
    %cst_18 = arith.constant dense<0xFF800000> : vector<8xf32>
    %19 = vector.multi_reduction <maximumf>, %17, %cst_18 [1] : vector<8x8xf32> to vector<8xf32>
    %20 = vector.shape_cast %19 : vector<8xf32> to vector<8x1xf32>
    %21 = arith.maximumf %18, %20 : vector<8x1xf32>
    %22 = arith.subf %18, %21 : vector<8x1xf32>
    %23 = math.exp %22 : vector<8x1xf32>
    %24 = vector.broadcast %21 : vector<8x1xf32> to vector<8x8xf32>
    %25 = arith.subf %17, %24 : vector<8x8xf32>
    %26 = math.exp %25 : vector<8x8xf32>
    %c0_19 = arith.constant 0 : index
    %c0_20 = arith.constant 0 : index
    %27 = vector.load %arg14[%c0_19, %c0_20] : memref<8x1xf32, #tpu.memory_space<vmem>>, vector<8x1xf32>
    %28 = arith.mulf %23, %27 : vector<8x1xf32>
    %cst_21 = arith.constant dense<0.000000e+00> : vector<8xf32>
    %29 = vector.multi_reduction <add>, %26, %cst_21 [1] : vector<8x8xf32> to vector<8xf32>
    %30 = vector.shape_cast %29 : vector<8xf32> to vector<8x1xf32>
    %31 = arith.addf %28, %30 : vector<8x1xf32>
    %c0_22 = arith.constant 0 : index
    %c0_23 = arith.constant 0 : index
    %32 = vector.load %arg14[%c0_22, %c0_23] : memref<8x1xf32, #tpu.memory_space<vmem>>, vector<8x1xf32>
    tpu.vector_store %arg14[%c0_22, %c0_23], %31 {strides = array<i32>} : memref<8x1xf32, #tpu.memory_space<vmem>>, vector<8x1xf32>,
    %c0_24 = arith.constant 0 : index
    %c0_25 = arith.constant 0 : index
    %33 = vector.load %arg15[%c0_24, %c0_25] : memref<8x16xf32, #tpu.memory_space<vmem>>, vector<8x16xf32>
    %34 = vector.broadcast %23 : vector<8x1xf32> to vector<8x16xf32>
    %35 = arith.mulf %34, %33 : vector<8x16xf32>
    %cst_26 = arith.constant dense<0.000000e+00> : vector<8x16xf32>
    %36 = tpu.matmul %26, %15, %cst_26 {dimension_numbers = #tpu.dot_dimension_numbers<[1], [0], [0], [1], [0, 0, 1, 1], [], []>} : vector<8x8xf32>, vector<8x16xf32>, vector<8x16xf32> -> vector<8x16xf32>
    %37 = arith.addf %35, %36 : vector<8x16xf32>
    %c0_27 = arith.constant 0 : index
    %c0_28 = arith.constant 0 : index
    %38 = vector.load %arg15[%c0_27, %c0_28] : memref<8x16xf32, #tpu.memory_space<vmem>>, vector<8x16xf32>
    tpu.vector_store %arg15[%c0_27, %c0_28], %37 {strides = array<i32>} : memref<8x16xf32, #tpu.memory_space<vmem>>, vector<8x16xf32>,
    %c0_29 = arith.constant 0 : index
    %c0_30 = arith.constant 0 : index
    %39 = vector.load %arg13[%c0_29, %c0_30] : memref<8x1xf32, #tpu.memory_space<vmem>>, vector<8x1xf32>
    tpu.vector_store %arg13[%c0_29, %c0_30], %21 {strides = array<i32>} : memref<8x1xf32, #tpu.memory_space<vmem>>, vector<8x1xf32>,
    %c0_i32_31 = arith.constant 0 : i32
    %40 = arith.cmpi eq, %arg3, %c0_i32_31 : i32
    %41 = arith.extui %40 : i1 to i32
    %c0_i32_32 = arith.constant 0 : i32
    %42 = arith.cmpi ne, %41, %c0_i32_32 : i32
    scf.if %42 {
      %c0_35 = arith.constant 0 : index
      %c0_36 = arith.constant 0 : index
      %48 = vector.load %arg14[%c0_35, %c0_36] : memref<8x1xf32, #tpu.memory_space<vmem>>, vector<8x1xf32>
      %49 = tpu.reciprocal %48 : vector<8x1xf32> -> vector<8x1xf32>
      %c0_37 = arith.constant 0 : index
      %c0_38 = arith.constant 0 : index
      %50 = vector.load %arg15[%c0_37, %c0_38] : memref<8x16xf32, #tpu.memory_space<vmem>>, vector<8x16xf32>
      %51 = vector.broadcast %49 : vector<8x1xf32> to vector<8x16xf32>
      %52 = arith.mulf %50, %51 : vector<8x16xf32>
      %c0_39 = arith.constant 0 : index
      %c0_40 = arith.constant 0 : index
      %53 = vector.load %arg16[%c0_39, %c0_40] : memref<8x32xf32, #tpu.memory_space<vmem>>, vector<8x32xf32>
      %c0_41 = arith.constant 0 : index
      %c0_42 = arith.constant 0 : index
      %c0_43 = arith.constant 0 : index
      %54 = vector.load %arg9[%c0_41, %c0_42, %c0_43] : memref<1x16x32xf32, #tpu.memory_space<vmem>>, vector<1x16x32xf32>
      %55 = vector.shape_cast %54 : vector<1x16x32xf32> to vector<16x32xf32>
      %cst_44 = arith.constant dense<0.000000e+00> : vector<8x32xf32>
      %56 = tpu.matmul %52, %55, %cst_44 {dimension_numbers = #tpu.dot_dimension_numbers<[1], [0], [0], [1], [0, 0, 1, 1], [], []>} : vector<8x16xf32>, vector<16x32xf32>, vector<8x32xf32> -> vector<8x32xf32>
      %57 = arith.addf %53, %56 : vector<8x32xf32>
      %c0_45 = arith.constant 0 : index
      %c0_46 = arith.constant 0 : index
      %58 = vector.load %arg16[%c0_45, %c0_46] : memref<8x32xf32, #tpu.memory_space<vmem>>, vector<8x32xf32>
      tpu.vector_store %arg16[%c0_45, %c0_46], %57 {strides = array<i32>} : memref<8x32xf32, #tpu.memory_space<vmem>>, vector<8x32xf32>,
    } else {
    }
    %c1_i32 = arith.constant 1 : i32
    %43 = arith.cmpi eq, %arg2, %c1_i32 : i32
    %c0_i32_33 = arith.constant 0 : i32
    %44 = arith.cmpi eq, %arg3, %c0_i32_33 : i32
    %45 = arith.andi %43, %44 : i1
    %46 = arith.extui %45 : i1 to i32
    %c0_i32_34 = arith.constant 0 : i32
    %47 = arith.cmpi ne, %46, %c0_i32_34 : i32
    scf.if %47 {
      %c0_35 = arith.constant 0 : index
      %c0_36 = arith.constant 0 : index
      %48 = vector.load %arg16[%c0_35, %c0_36] : memref<8x32xf32, #tpu.memory_space<vmem>>, vector<8x32xf32>
      %c0_37 = arith.constant 0 : index
      %c0_38 = arith.constant 0 : index
      %49 = vector.load %arg10[%c0_37, %c0_38] : memref<1x32xf32, #tpu.memory_space<vmem>>, vector<1x32xf32>
      %50 = vector.broadcast %49 : vector<1x32xf32> to vector<8x32xf32>
      %51 = arith.addf %48, %50 : vector<8x32xf32>
      %c0_39 = arith.constant 0 : index
      %c0_40 = arith.constant 0 : index
      %c0_41 = arith.constant 0 : index
      %52 = vector.load %arg11[%c0_39, %c0_40, %c0_41] : memref<1x8x32xf32, #tpu.memory_space<vmem>>, vector<1x8x32xf32>
      %53 = vector.shape_cast %52 : vector<1x8x32xf32> to vector<8x32xf32>
      %54 = vector.shape_cast %51 : vector<8x32xf32> to vector<1x8x32xf32>
      tpu.vector_store %arg11[%c0_39, %c0_40, %c0_41], %54 {strides = array<i32>} : memref<1x8x32xf32, #tpu.memory_space<vmem>>, vector<1x8x32xf32>,
    } else {
    }
    return
  }
  func.func @transform_0(%arg0: i32, %arg1: i32, %arg2: i32, %arg3: i32) -> (i32, i32, i32) {
    %c0_i32 = arith.constant 0 : i32
    %c0_i32_0 = arith.constant 0 : i32
    return %arg0, %arg1, %c0_i32 : i32, i32, i32
  }
  func.func @transform_1(%arg0: i32, %arg1: i32, %arg2: i32, %arg3: i32) -> (i32, i32, i32) {
    %c0_i32 = arith.constant 0 : i32
    %c0_i32_0 = arith.constant 0 : i32
    return %arg0, %arg3, %c0_i32 : i32, i32, i32
  }
  func.func @transform_2(%arg0: i32, %arg1: i32, %arg2: i32, %arg3: i32) -> (i32, i32, i32) {
    %c0_i32 = arith.constant 0 : i32
    %c0_i32_0 = arith.constant 0 : i32
    %c0_i32_1 = arith.constant 0 : i32
    return %arg2, %c0_i32, %c0_i32_0 : i32, i32, i32
  }
  func.func @transform_3(%arg0: i32, %arg1: i32, %arg2: i32, %arg3: i32) -> (i32, i32, i32) {
    %c0_i32 = arith.constant 0 : i32
    %c0_i32_0 = arith.constant 0 : i32
    %c0_i32_1 = arith.constant 0 : i32
    return %arg2, %c0_i32, %c0_i32_0 : i32, i32, i32
  }
  func.func @transform_4(%arg0: i32, %arg1: i32, %arg2: i32, %arg3: i32) -> (i32, i32, i32) {
    %c0_i32 = arith.constant 0 : i32
    %c0_i32_0 = arith.constant 0 : i32
    %c0_i32_1 = arith.constant 0 : i32
    return %arg2, %c0_i32, %c0_i32_0 : i32, i32, i32
  }
  func.func @transform_5(%arg0: i32, %arg1: i32, %arg2: i32, %arg3: i32) -> (i32, i32, i32) {
    %c0_i32 = arith.constant 0 : i32
    %c0_i32_0 = arith.constant 0 : i32
    %c0_i32_1 = arith.constant 0 : i32
    return %arg2, %c0_i32, %c0_i32_0 : i32, i32, i32
  }
  func.func @transform_6(%arg0: i32, %arg1: i32, %arg2: i32, %arg3: i32) -> (i32, i32) {
    %c0_i32 = arith.constant 0 : i32
    %c0_i32_0 = arith.constant 0 : i32
    %c0_i32_1 = arith.constant 0 : i32
    return %c0_i32, %c0_i32_0 : i32, i32
  }
  func.func @transform_7(%arg0: i32, %arg1: i32, %arg2: i32, %arg3: i32) -> (i32, i32, i32) {
    %c0_i32 = arith.constant 0 : i32
    %c0_i32_0 = arith.constant 0 : i32
    return %arg0, %arg1, %c0_i32 : i32, i32, i32
  }
}

</mosaic_0001>

<bundles_post_ra>
// kernel: tpu_custom_call.1
= control target key start
LH: loop header
LB: loop body
LE: loop exit
PB: predicated region body
PF: predicated region fallthrough
CT: control target
= control target key end

     0   :  { %12 = vsyncpa [#allocation8], 0  ;;  %s1697_s0 = inlined_call_operand.vmem [shape: f32[2,8,32], index: 0, kind: input, shape index: {}]   ;;  %s1698_s1 = inlined_call_operand.vmem [shape: f32[2,8,32], index: 1, kind: input, shape index: {}]   ;;  %s1699_s2 = inlined_call_operand.vmem [shape: f32[2,32,16], index: 2, kind: input, shape index: {}]   ;;  %s1700_s3 = inlined_call_operand.vmem [shape: f32[2,32,16], index: 3, kind: input, shape index: {}]   ;;  %s1701_s4 = inlined_call_operand.vmem [shape: f32[2,32,16], index: 4, kind: input, shape index: {}]   ;;  %s1702_s5 = inlined_call_operand.vmem [shape: f32[2,16,32], index: 5, kind: input, shape index: {}]   ;;  %s1703_s6 = inlined_call_operand.vmem [shape: f32[1,32], index: 6, kind: input, shape index: {}]   ;;  %s1704_s7 = inlined_call_operand.hbm [shape: f32[2,8,32], index: 7, kind: output, shape index: {}]  }
   0x1   :  { %14 = vsyncpa [#allocation8 + $0x1], 0  ;;  %s1477_s24 = smov 0   ;;  %s1479_s25 = smov 0  }
   0x2   :  { %s1481_s26 = smov 0   ;;  %s1483_s27 = smov 0  }
   0x3   :  { %s1485_s28 = smov 0   ;;  %s1487_s29 = smov 0  }
   0x4   :  { %s1489_s30 = smov 0   ;;  %s1491_s8 = smov 0  }
   0x5 LB: > { %1711 = sst [smem:[#allocation10_spill]] %s1408_s26  ;;  %s1120_s9 = sadd.s32 4294967295, %s1428_s8   ;;  %s1428_s8 = sphi %s1491_s8, %s20_s8   ;;  %s1424_s30 = sphi %s1489_s30, %s1727_s30   ;;  %s1420_s29 = sphi %s1487_s29, %s1726_s29   ;;  %s1416_s28 = sphi %s1485_s28, %s1725_s28   ;;  %s1412_s27 = sphi %s1483_s27, %s1724_s27   ;;  %s1408_s26 = sphi %s1481_s26, %s1723_s26   ;;  %s1404_s25 = sphi %s1479_s25, %s1729_s25   ;;  %s1400_s24 = sphi %s1477_s24, %s1728_s24  }
   0x6   : > { %1712 = sst [smem:[#allocation11_spill]] %s1420_s29  ;;  %s1121_s10 = sadd.s32 4294967294, %s1428_s8  }
   0x7   : > { %1713 = sst [smem:[#allocation12_spill]] %s1424_s30  ;;  %s38_s11 = sadd.s32 1, %s1420_s29 }
   0x8   : > { %p40_p0 = scmp.ge.s32.totalorder %s38_s11, 2  ;;  %s46_s12 = sadd.s32 1, %s1424_s30 }
   0x9   : > { %p246_p1 = scmp.ne.s32.totalorder %s1408_s26, %s1404_s25  ;;  %p247_p2 = scmp.eq.s32.totalorder %s1120_s9, 3 }
   0xa   : > { %s1731_s11 = smov (%p40_p0, %s38_s11), 0  ;;  %s1733_s12 = smov (!%p40_p0, %s46_s12), %s1424_s30 }
   0xb   : > { %1714 = sst [smem:[#allocation13_spill]] %s1731_s11  ;;  %p1526_p3 = por %p247_p2, %p246_p1 }
   0xc   : > { %p252_p4 = scmp.ne.s32.totalorder %s1404_s25, %s1400_s24  ;;  %p48_p5 = scmp.ge.s32.totalorder %s1733_s12, 2 }
   0xd   : > { %p253_p6 = scmp.eq.s32.totalorder %s1121_s10, 3  ;;  %p1124_p7 = scmp.ge.s32.totalorder %s1428_s8, 1 }
   0xe   : > { %p326_p8 = scmp.lt.s32.totalorder %s1428_s8, 5  ;;  %s1735_s12 = smov (%p48_p5, %s1733_s12), 0 }
   0xf   : > { %1716 = sst [smem:[#allocation14_spill]] %s1735_s12  ;;  %p1536_p9 = por %p253_p6, %p252_p4 }
  0x10   : > { %p327_p10 = pnand %p1124_p7, %p326_p8  ;;  %s231_s15 = ssub.s32 %s1424_s30, %s1735_s12 }
  0x11   : > { %s1717_s14 = scalar_select %p1536_p9, 1, 0 }
  0x12   : > { %s236_s16 = sadd.s32 1, %s1408_s26  ;;  %p234_p11 = scmp.eq.s32.totalorder %s231_s15, 0  ;;  %vm507_vm0 = vcmask (!%p327_p10), 7168   ;;  %v1430_v0 = vmov (!%p327_p10), 0.0|0.0   ;;  %vm1431_vm1 = vmmov (!%p327_p10), 0   ;;  %v1432_v1 = vmov (!%p327_p10), 0.0  }
  0x13   : > { %1718 = sst [smem:[#allocation15_spill]] %s1717_s14  ;;  %330 = sbr.rel (%p327_p10) target bundleno = 1524 (0x5f4), region = 48  ;;  %1228 = vmatprep.subr.bf16.mxu0 (!%p327_p10), %v1430_v0  ;;  %1186 = vmatprep.mubr.msk.f32.mxu0 (!%p327_p10), %vm1431_vm1, %v1432_v1  ;;  %509 = vst.msk [vmem:[#allocation4] sm:$0xff] (!%p327_p10), %vm507_vm0, %v1432_v1  ;;  %v1433_v2 = vmov (!%p327_p10), -inf   ;;  %vm430_vm2 = vcmask (!%p327_p10), 261120   ;;  %vm505_vm3 = vcmask (!%p327_p10), 130048  }
  0x14   : > { %s1544_s17 = scalar_select %p234_p11, %s1408_s26, %s236_s16  }
  0x15   : > { %s1705_s18 = sand.u32 (!%p327_p10), 1, %s1404_s25   ;;  %p401_p12 = scmp.lt.s32.totalorder (!%p327_p10), %s1412_s27, 1  ;;  %508 = vst.msk [vmem:[#allocation3] sm:$0xff] (!%p327_p10), %vm507_vm0, %v1433_v2 }
  0x16   : > { %1719 = sst [smem:[#allocation16_spill]] %s1544_s17  ;;  %s1550_s19 = sshll.u32 (!%p327_p10), %s1705_s18, 3  ;;  %510 = vst.msk [vmem:[#allocation5] sm:$0xff] (!%p327_p10), %vm505_vm3, %v1432_v1 }
  0x17   : > { %p387_p13 = scmp.lt.s32.totalorder (!%p327_p10), %s1416_s28, 1  ;;  %p511_p0 = scmp.eq.s32.totalorder (!%p327_p10), %s1412_s27, 0 }
  0x18   : > { %s386_s17 = scalar_lea.vmem (!%p327_p10), [#allocation7], %s1550_s19 }
  0x1a   : > { %s402_s20 = scalar_select %p401_p12, %s1412_s27, 1 }
  0x1b   : > { %s388_s21 = scalar_select %p387_p13, %s1416_s28, 1 }
  0x1c   : > { %s1150_s22 = sshll.u32 %s402_s20, 5  ;;  %s1153_s23 = sshll.u32 %s402_s20, 4  ;;  %v1434_v13 = vmov (%p511_p0), 0.0  }
  0x1d   : > { %s405_s15 = scalar_lea.vmem %s1699_s2, %s1150_s22  ;;  %s1567_s12 = scalar_lea.vmem %s1700_s3, %s1150_s22  ;;  %517 = vst.msk [vmem:[#allocation6] sm:$0xff] (%p511_p0), %vm430_vm2, %v1434_v13 }
  0x1e   : > { %s1572_s29 = scalar_lea.vmem %s1701_s4, %s1150_s22  ;;  %s1577_s14 = scalar_lea.vmem %s1702_s5, %s1153_s23  ;;  %v426_v3 = vld [vmem:[%s405_s15] sm:$0xff]  ;;  %v427_v4 = vld [vmem:[%s405_s15 + $0x8] sm:$0xff]  ;;  %v428_v5 = vld [vmem:[%s405_s15 + $0x10] sm:$0xff] }
  0x1f   : > { %v1229_v6 = vpack.c.bf16 %v427_v4, %v426_v3  ;;  %v429_v7 = vld [vmem:[%s405_s15 + $0x18] sm:$0xff]  ;;  %s1126_s20 = sshll.u32 %s388_s21, 3 }
  0x20   : > { %s1582_s10 = scalar_lea.vmem %s1698_s1, %s1126_s20  ;;  %v1232_v8 = vpack.c.bf16 %v429_v7, %v428_v5  ;;  %s393_s11 = scalar_lea.vmem %s1697_s0, %s1126_s20 }
  0x21   : > { %1230 = vmatpush3.bf16.msra.mxu0 %v1229_v6  ;;  %v425_v9 = vld [vmem:[%s393_s11] sm:$0xff] }
  0x22   : > { %1231 = vmatprep.subr.bf16.mxu0 %v1430_v0 }
  0x25   : > { %1233 = vmatpush3.bf16.msra.mxu0 %v1232_v8 }
  0x28   : > { %1187 = vmatmul.mubr.msk.f32.vlgmr.msra.gmra.mrb[0].mxu0 %vm430_vm2, %v425_v9 }
  0xf8   : > { %515 = sbr.rel (!%p511_p0) target bundleno = 255 (0xff), region = 56 }
  0xfb   : > { %v500_v10 = vpop.f32.mrb[0].mxu0 }
  0xfc   : > { %v504_v11 = vmul.f32 0.25, %v500_v10  ;;  %v1188_v12 = vpop.f32.mrb[1].mxu0 }
  0xfe   : > { %506 = vst.msk [vmem:[#allocation2] sm:$0xff] %vm505_vm3, %v504_v11 }
  0xff PF: > { %1234 = vmatprep.subr.bf16.mxu1 %v1430_v0  ;;  %v519_v14 = vld [vmem:[%s1567_s12] sm:$0xff]  ;;  %v520_v15 = vld [vmem:[%s1567_s12 + $0x8] sm:$0xff]  ;;  %v521_v16 = vld [vmem:[%s1567_s12 + $0x10] sm:$0xff]  ;;  %1197 = vmatprep.mubr.msk.f32.mxu1 %vm1431_vm1, %v1432_v1  ;;  %vm750_vm4 = vcmask 64512   ;;  %v1435_v33 = vmov 0   ;;  %p947_p1 = scmp.eq.s32.totalorder %s1412_s27, 1 }
 0x100   : > { %v1235_v17 = vpack.c.bf16 %v520_v15, %v519_v14  ;;  %v522_v18 = vld [vmem:[%s1567_s12 + $0x18] sm:$0xff]  ;;  %1240 = vmatprep.subr.bf16.mxu0 %v1430_v0  ;;  %1208 = vmatprep.mubr.msk.f32.mxu0 %vm1431_vm1, %v1432_v1  ;;  %v518_v20 = vld [vmem:[%s1582_s10] sm:$0xff]  ;;  %v598_v25 = vld [vmem:[%s1572_s29 + $0x8] sm:$0xff] }
 0x101   : > { %v1238_v19 = vpack.c.bf16 %v522_v18, %v521_v16  ;;  %v597_v24 = vld [vmem:[%s1572_s29] sm:$0xff]  ;;  %v599_v26 = vld [vmem:[%s1572_s29 + $0x10] sm:$0xff]  ;;  %v600_v28 = vld [vmem:[%s1572_s29 + $0x18] sm:$0xff]  ;;  %1326 = vset.pattern.permute.xlu0 %v1435_v33  ;;  %1327 = vset.pattern.permute.xlu1 %v1435_v33 }
 0x102   : > { %1236 = vmatpush3.bf16.msra.mxu1 %v1235_v17  ;;  %v1241_v27 = vpack.c.bf16 %v598_v25, %v597_v24  ;;  %v1244_v29 = vpack.c.bf16 %v600_v28, %v599_v26  ;;  %v749_v34 = vld [vmem:[#allocation3] sm:$0xff]  ;;  %v870_v47 = vld [vmem:[%s1577_s14] sm:$0xff]  ;;  %v766_v50 = vld [vmem:[#allocation4] sm:$0xff] }
 0x103   : > { %1237 = vmatprep.subr.bf16.mxu1 %v1430_v0  ;;  %v871_v48 = vld [vmem:[%s1577_s14 + $0x8] sm:$0xff]  ;;  %v774_v56 = vld [vmem:[#allocation5] sm:$0xff]  ;;  %v1145_v6 = vld [vmem:[%s1703_s6] ss:$0 sm:$0xff] (%p947_p1) }
 0x104   : > { %1242 = vmatpush3.bf16.msra.mxu0 %v1241_v27  ;;  %v1247_v49 = vpack.c.bf16 %v871_v48, %v870_v47 }
 0x105   : > { %v671_v23 = vld [vmem:[#allocation2] sm:$0xff]  ;;  %1243 = vmatprep.subr.bf16.mxu0 %v1430_v0 }
 0x106   : > { %1239 = vmatpush3.bf16.msra.mxu1 %v1238_v19 }
 0x107   : > { %1211 = vmatprep.subr.mxu1 %v1432_v1 }
 0x108   : > { %1245 = vmatpush3.bf16.msra.mxu0 %v1244_v29 }
 0x109   : > { %1198 = vmatmul.mubr.msk.f32.vlgmr.msra.gmra.mrb[0].mxu1 %vm430_vm2, %v518_v20  ;;  %1246 = vmatprep.subr.bf16.mxu0 %v1430_v0 }
 0x10a   : > { %1213 = vmatprep.mubr.msk.f32.mxu1 %vm1431_vm1, %v1432_v1 }
 0x10b   : > { %1209 = vmatmul.mubr.msk.f32.vlgmr.msra.gmra.mrb[2].mxu0 %vm430_vm2, %v518_v20 }
 0x10c   : > { %1225 = vmatprep.mubr.msk.f32.mxu0 %vm1431_vm1, %v1432_v1  ;;  %1248 = vmatpush3.bf16.msra.mxu0 %v1247_v49 }
 0x1dc   : > { %v593_v21 = vpop.f32.mrb[0].mxu1 }
 0x1dd   : > { %v1199_v22 = vpop.f32.mrb[1].mxu1  ;;  %1212 = vmatpush3.xpose.msk.msra.mxu1 %vm505_vm3, %v593_v21 }
 0x1de   : > { %1216 = vmatprep.subr.mxu1 %v1432_v1  ;;  %v667_v38 = vpop.f32.mrb[2].mxu0 }
 0x1df   : > { %v1210_v39 = vpop.f32.mrb[3].mxu0 }
 0x1e0   : > { %1214 = vmatmul.mubr.msk.f32.vlgmr.msra.gmra.mrb[2].mxu1 %vm505_vm3, %v671_v23 }
 0x1e1   : > { %1218 = vmatprep.mubr.msk.f32.mxu1 %vm1431_vm1, %v1432_v1  ;;  %1217 = vmatpush3.msra.mxu1 %v667_v38  ;;  %v869_v1 = vld [vmem:[#allocation6] sm:$0xff] }
 0x2b3   : > { %v745_v30 = vpop.f32.mrb[2].mxu1 }
 0x2b4   : > { %v1215_v31 = vpop.f32.mrb[3].mxu1  ;;  %v751_v32 = vsel %vm750_vm4, %v745_v30, -inf }
 0x2b5   : > { %752 = vmax.xlane.f32.xlu0 %v751_v32 }
 0x342   : > { %v753_v35 = vpop.xlane.xlu0 %752 }
 0x343   : > { %v754_v36 = vmax.f32 %v749_v34, %v753_v35 }
 0x345   : > { %v755_v37 = vsub.f32 %v749_v34, %v754_v36  ;;  %856 = vst.msk [vmem:[#allocation3] sm:$0xff] %vm507_vm0, %v754_v36  ;;  %760 = vperm.xlu0 %1326, %v754_v36  }
 0x347   : > { %v756_v45 = vmul.f32 1.442695, %v755_v37 }
 0x3c4   : > { %v761_v40 = vpop.permute.xlu0 %760 }
 0x3c5   : > { %v763_v41 = vsub.f32 %v745_v30, %v761_v40 }
 0x3c7   : > { %v764_v42 = vmul.f32 1.442695, %v763_v41 }
 0x3c9   : > { %1328 = vpow2.f32 %v764_v42 }
 0x3ca   : > { %1330 = vpow2.f32 %v756_v45 }
 0x3d3   : > { %v1329_v43 = vpop.eup %1328 }
 0x3d4   : > { %1219 = vmatmul.mubr.msk.f32.vlgmr.msra.gmra.mrb[4].mxu1 %vm750_vm4, %v1329_v43  ;;  %v768_v44 = vsel %vm750_vm4, %v1329_v43, 0.0  ;;  %v1331_v46 = vpop.eup %1330 }
 0x3d5   : > { %769 = vadd.xlane.f32.xlu1 %v768_v44  ;;  %v767_v51 = vmul.f32 %v1331_v46, %v766_v50 }
 0x3e6   : > { %777 = vperm.xlu1 %1327, %v1331_v46  }
 0x462   : > { %v770_v52 = vpop.xlane.xlu1 %769 }
 0x463   : > { %v771_v53 = vadd.f32 %v770_v52, %v767_v51 }
 0x465   : > { %773 = vst.msk [vmem:[#allocation4] sm:$0xff] %vm507_vm0, %v771_v53 }
 0x466   : > { %v778_v57 = vpop.permute.xlu1 %777 }
 0x467   : > { %v780_v58 = vmul.f32 %v778_v57, %v774_v56 }
 0x46c   : > { %v860_v54 = vld [vmem:[#allocation4] sm:$0xff] }
 0x46d   : > { %1332 = vrcp.f32 %v860_v54 }
 0x477   : > { %v1333_v55 = vpop.eup %1332 }
 0x478   : > { %865 = vperm.xlu1 %1327, %v1333_v55  }
 0x4a7   : > { %v850_v59 = vpop.f32.mrb[4].mxu1 }
 0x4a8   : > { %v854_v60 = vadd.f32 %v850_v59, %v780_v58  ;;  %v1220_v61 = vpop.f32.mrb[5].mxu1 }
 0x4aa   : > { %855 = vst.msk [vmem:[#allocation5] sm:$0xff] %vm505_vm3, %v854_v60 }
 0x4b1   : > { %v862_v63 = vld [vmem:[#allocation5] sm:$0xff] }
 0x4f7   : > { %v866_v62 = vpop.permute.xlu1 %865 }
 0x4f8   : > { %v868_v0 = vmul.f32 %v866_v62, %v862_v63 }
 0x4fa   : > { %1226 = vmatmul.mubr.msk.f32.vlgmr.msra.gmra.mrb[4].mxu0 %vm505_vm3, %v868_v0 }
 0x5ca   : > { %951 = sbr.rel (!%p947_p1) target bundleno = 1499 (0x5db), region = 64 }
 0x5cd   : > { %v941_v2 = vpop.f32.mrb[4].mxu0 }
 0x5ce   : > { %v945_v3 = vadd.f32 %v941_v2, %v869_v1  ;;  %v1227_v4 = vpop.f32.mrb[5].mxu0 }
 0x5d0   : > { %946 = vst.msk [vmem:[#allocation6] sm:$0xff] %vm430_vm2, %v945_v3 }
 0x5d7   : > { %v952_v5 = vld [vmem:[#allocation6] sm:$0xff] }
 0x5d8   : > { %v960_v7 = vadd.f32 %v1145_v6, %v952_v5 }
 0x5da   : > { %961 = vst.msk [vmem:[%s386_s17] sm:$0xff] %vm430_vm2, %v960_v7 }
 0x5db PF: > { %s1147_s27 = sshll.u32 %s1416_s28, 7  ;;  %s977_s23 = sshll.u32 %s386_s17, 4  ;;  %s978_s23 = int_to_ptr.vmem [resolvable:$true] %s977_s23 }
 0x5dc   : > { %s1646_s22 = scalar_lea.hbm %s1704_s7, %s1147_s27  ;;  %s1720_s15 = sand.u32 1, %s1404_s25  }
 0x5dd   : > { %s963_s16 = scalar_lea.sflag [#allocation8], %s1720_s15  ;;  %s1334_s20 = scalar_lea.vmem %s978_s23, 128 }
 0x5de   : > { %p1335_p2 = scmp.ne.s32.totalorder %s978_s23, %s1334_s20  ;;  %s1436_s18 = smov [#allocation7]  }
 0x5df   : > { %s1338_s9 = sshll.u32 %s1436_s18, 4  ;;  %s1339_s9 = int_to_ptr.vmem [resolvable:$false] %s1338_s9 }
 0x5e0   : > { %p1336_p4 = pnand %p1335_p2, %p1526_p3  ;;  %s1340_s10 = scalar_lea.vmem %s1339_s9, 256 }
 0x5e1   : > { %p1341_p6 = scmp.lt.s32.totalorder %s978_s23, %s1339_s9  ;;  %p1342_p7 = scmp.lt.s32.totalorder %s1340_s10, %s1334_s20 }
 0x5e2   : > { %p1337_p5 = pneg %p1336_p4 }
 0x5e3   : > { %p1343_p8 = por %p1342_p7, %p1341_p6 }
 0x5e5   : > { %p1344_p10 = pnand %p1343_p8, %p1337_p5 }
 0x5e7   : > { %1347 = shalt.err (!%p1344_p10)
}
 0x5e8   : > { %s1348_s28 = scalar_lea.hbm %s1646_s22, 128  ;;  %s1352_s30 = scalar_lea.hbm %s1704_s7, 256 }
 0x5e9   : > { %p1349_p11 = scmp.ne.s32.totalorder %s1646_s22, %s1348_s28  ;;  %p1353_p0 = scmp.lt.u32.totalorder %s1646_s22, %s1704_s7 }
 0x5ea   : > { %p1354_p1 = scmp.lt.u32.totalorder %s1352_s30, %s1348_s28  ;;  %p1356_p4 = scmp.lt.u32.totalorder %s1348_s28, %s1646_s22 }
 0x5eb   : > { %p1350_p12 = pnand %p1349_p11, %p1526_p3 }
 0x5ec   : > { %p1355_p2 = por %p1354_p1, %p1353_p0 }
 0x5ed   : > { %p1351_p13 = pneg %p1350_p12 }
 0x5ee   : > { %p1357_p5 = por %p1356_p4, %p1355_p2 }
 0x5f0   : > { %p1358_p6 = pnand %p1357_p5, %p1351_p13 }
 0x5f2   : > { %1361 = shalt.err (!%p1358_p6)
}
 0x5f3   : > { %1249 = dma.vmem_to_hbm [thread:$0]  (%p1526_p3), %s978_s23, 128, %s1646_s22, %s963_s16  }
 0x5f4 PF: > { %p1255_p7 = scmp.ge.s32.totalorder %s1428_s8, 2  ;;  %s989_s12 = sand.u32 1, %s1400_s24  }
 0x5f5   : > { %s990_s27 = scalar_lea.sflag [#allocation8], %s989_s12 }
 0x5f6   : > { %p1252_p8 = pnand %p1255_p7, %p1536_p9 }
 0x5f8   : > { %1395 = dma.done.wait (!%p1252_p8), %s990_s27, 128  }
 0x5f9   : > { %1397 = vsyncadd (!%p1252_p8), %s990_s27, 4294967168  ;;  %s20_s8 = sadd.s32 1, %s1428_s8   ;;  %s1722_s14 = sld [smem:[#allocation10_spill]] }
 0x5fa   : > { %p17_p10 = scmp.ge.s32.totalorder %s20_s8, 6   ;;  %s1723_s26 = sld [smem:[#allocation16_spill]] }
 0x5fb   : > { %s1724_s27 = sld [smem:[#allocation11_spill]]  ;;  %s1725_s28 = sld [smem:[#allocation12_spill]] }
 0x5fc   : > { %s1726_s29 = sld [smem:[#allocation13_spill]]  ;;  %s1727_s30 = sld [smem:[#allocation14_spill]] }
 0x5fd   : > { %s1728_s24 = smov %s1404_s25  ;;  %19 = sbr.rel (!%p17_p10) target bundleno = 5 (0x5), region = 114 }
 0x5ff   : > { %s1729_s25 = smov %s1722_s14 }
 0x604   :  { %995 = vsyncpa [#allocation8], 1 }
 0x605   :  { %997 = vsyncpa [#allocation8 + $0x1], 1 }

</bundles_post_ra>
